<compile_context>
chip_gen: v5e
topology: v5e:2x2
jax: 0.10.0
libtpu: 0.0.40
codegen_flags: <defaults>
</compile_context>

<pallas_src>
import jax
import jax.numpy as jnp
from jax.experimental import pallas as pl
from jax.experimental.pallas import tpu as pltpu

H1, H2 = 128, 64  # hidden sizes from the PyTorch module


def mlp_kernel(x_ref, w1_ref, b1_ref, w2_ref, b2_ref, w3_ref, b3_ref, o_ref):
    # x arrives f32; cast to bf16 on the VPU (hidden under DMA/MXU) for the first dot.
    x = x_ref[...].astype(jnp.bfloat16)

    h1 = jnp.dot(x, w1_ref[...], preferred_element_type=jnp.float32) + b1_ref[...]
    h1 = jnp.maximum(h1, 0.0)

    # Keep activations in f32 for the remaining (tiny) dots: avoids compounding
    # bf16 rounding across three chained matmuls; throughput cost is irrelevant here.
    h2 = jnp.dot(h1, w2_ref[...].astype(jnp.float32),
                 preferred_element_type=jnp.float32) + b2_ref[...]
    h2 = jnp.maximum(h2, 0.0)

    h3 = jnp.dot(h2, w3_ref[...].astype(jnp.float32),
                 preferred_element_type=jnp.float32) + b3_ref[...]
    o_ref[...] = jnp.tanh(h3).astype(o_ref.dtype)


def _round_up(n, m):
    return ((n + m - 1) // m) * m


def _choose_tm(B, in_size, out_size):
    """Batch-tile rows: >=2 grid steps when possible, small padding, VMEM-aware cap."""
    rows = _round_up(B, 8)
    if rows <= 16:
        return rows  # too small to split across 2 TCs
    # Cap so double-buffered f32 x tile + out tile stay within ~8 MiB
    # (comfortable under v5e's 16 MiB and v7x's 32 MiB default scoped VMEM).
    bytes_per_row = 4 * (in_size + out_size)
    cap = (8 << 20) // (2 * bytes_per_row)
    cap = max(16, min(4096, (cap // 16) * 16))
    # Split into n >= 2 tiles (v7x megacore) of 16-row-aligned size; keeps padding small.
    n = max(2, -(-rows // cap))
    tm = _round_up(-(-B // n), 16)
    return min(tm, cap)


def prepare_params(params):
    """One-time conversion of f32 params to kernel layout (bf16 weights, f32 biases).

    Call once and reuse across forwards so no per-call cast/pad ops hit the device.
    """
    return {
        "w1": params["w1"].astype(jnp.bfloat16),
        "b1": params["b1"].astype(jnp.float32),
        "w2": params["w2"].astype(jnp.bfloat16),
        "b2": params["b2"].astype(jnp.float32),
        "w3": params["w3"].astype(jnp.bfloat16),
        "b3": params["b3"].astype(jnp.float32),
    }


def neural_network_forward(x, prepared, *, tm=None):
    """Pallas forward of NeuralNetwork(input_size, output_size).

    x: (B, input_size) float32
    prepared: output of prepare_params() -- w1 (in,128) bf16, b1 (1,128) f32,
              w2 (128,64) bf16, b2 (1,64) f32, w3 (64,out) bf16, b3 (1,out) f32.
    Returns (B, output_size) float32.
    """
    w1, b1 = prepared["w1"], prepared["b1"]
    w2, b2 = prepared["w2"], prepared["b2"]
    w3, b3 = prepared["w3"], prepared["b3"]

    B, in_size = x.shape
    out_size = w3.shape[1]

    if tm is None:
        tm = _choose_tm(B, in_size, out_size)
    bp = _round_up(B, tm)
    if bp != B:
        x = jnp.pad(x, ((0, bp - B), (0, 0)))

    grid = (bp // tm,)

    # Weights/biases: full-array blocks with constant index_maps -> VMEM-resident,
    # no re-DMA across grid steps.
    resident = lambda arr: pl.BlockSpec(arr.shape, lambda i: (0,) * arr.ndim)

    weight_bytes = sum(int(a.size) * a.dtype.itemsize for a in (w1, b1, w2, b2, w3, b3))
    cost = pl.CostEstimate(
        flops=2 * bp * (in_size * H1 + H1 * H2 + H2 * out_size),
        transcendentals=bp * out_size,
        bytes_accessed=bp * in_size * 4 + bp * out_size * 4 + weight_bytes,
    )

    # Explicit VMEM budget: double-buffered x/out tiles, (conservatively) double-
    # buffered resident weights, plus activation temps and slack.
    tile_bytes = tm * in_size * 4 + tm * out_size * 4
    needed = 2 * tile_bytes + 2 * weight_bytes + tm * (H1 + H2) * 4 + (1 << 20)
    vmem_limit = int(min(56 << 20, max(2 * needed, 16 << 20)))

    out = pl.pallas_call(
        mlp_kernel,
        out_shape=jax.ShapeDtypeStruct((bp, out_size), jnp.float32),
        grid=grid,
        in_specs=[
            pl.BlockSpec((tm, in_size), lambda i: (i, 0)),  # x: tiled over batch
            resident(w1), resident(b1),
            resident(w2), resident(b2),
            resident(w3), resident(b3),
        ],
        # Full-extent last dim (= out_size) satisfies the (8,128) rule; for small
        # out_size the masked store is far cheaper than 128-lane padded writeback.
        out_specs=pl.BlockSpec((tm, out_size), lambda i: (i, 0)),
        compiler_params=pltpu.CompilerParams(
            dimension_semantics=("parallel",),
            vmem_limit_bytes=vmem_limit,
        ),
        cost_estimate=cost,
    )(x, w1, b1, w2, b2, w3, b3)

    return out[:B] if bp != B else out


def init_params(key, input_size, output_size):
    """Deterministic init matching nn.Linear shapes (weights stored as (in, out))."""
    k1, k2, k3, k4, k5, k6 = jax.random.split(key, 6)

    def uniform_like_torch(kw, kb, fan_in, fan_out):
        # PyTorch default: U(-1/sqrt(fan_in), 1/sqrt(fan_in)) for both W and b.
        bound = 1.0 / jnp.sqrt(jnp.float32(fan_in))
        w = jax.random.uniform(kw, (fan_in, fan_out), jnp.float32, -bound, bound)
        b = jax.random.uniform(kb, (1, fan_out), jnp.float32, -bound, bound)
        return w, b

    w1, b1 = uniform_like_torch(k1, k2, input_size, H1)
    w2, b2 = uniform_like_torch(k3, k4, H1, H2)
    w3, b3 = uniform_like_torch(k5, k6, H2, output_size)
    return {"w1": w1, "b1": b1, "w2": w2, "b2": b2, "w3": w3, "b3": b3}


def reference_forward(x, params):
    h = jnp.maximum(x @ params["w1"] + params["b1"], 0.0)
    h = jnp.maximum(h @ params["w2"] + params["b2"], 0.0)
    return jnp.tanh(h @ params["w3"] + params["b3"])


if __name__ == "__main__":
    key = jax.random.PRNGKey(0)
    kx, kp = jax.random.split(key)

    batch = 8
    input_size = 32
    output_size = 8

    x = jax.random.normal(kx, (batch, input_size), dtype=jnp.float32)
    params = init_params(kp, input_size, output_size)

    prepared = prepare_params(params)          # one-time cast, reused per forward
    prepared = jax.block_until_ready(prepared)

    out = neural_network_forward(x, prepared)
    out = jax.block_until_ready(out)

    ref = reference_forward(x, params)
    assert out.shape == (batch, output_size)
    # bf16 weights (f32 accumulation / f32 activations) vs the f32 reference.
    assert jnp.allclose(out, ref, atol=2e-2, rtol=2e-2), float(jnp.max(jnp.abs(out - ref)))

    print("KERNEL_OK")
</pallas_src>

<mosaic_0001>
module attributes {stable_mosaic.version = 11 : i64} {
  func.func @mlp_kernel(%arg0: i32, %arg1: memref<8x32xf32, #tpu.memory_space<vmem>>, %arg2: memref<32x128xbf16, #tpu.memory_space<vmem>>, %arg3: memref<1x128xf32, #tpu.memory_space<vmem>>, %arg4: memref<128x64xbf16, #tpu.memory_space<vmem>>, %arg5: memref<1x64xf32, #tpu.memory_space<vmem>>, %arg6: memref<64x8xbf16, #tpu.memory_space<vmem>>, %arg7: memref<1x8xf32, #tpu.memory_space<vmem>>, %arg8: memref<8x8xf32, #tpu.memory_space<vmem>>) attributes {dimension_semantics = [#tpu.dimension_semantics<parallel>], iteration_bounds = array<i64: 1>, scalar_prefetch = 0 : i64, scratch_operands = 0 : i64, tpu.core_type = #tpu.core_type<tc>, window_params = [{transform_indices = @transform_0, window_bounds = array<i64: 8, 32>}, {pipeline_mode = #tpu.pipeline_mode<synchronous>, transform_indices = @transform_1, window_bounds = array<i64: 32, 128>}, {pipeline_mode = #tpu.pipeline_mode<synchronous>, transform_indices = @transform_2, window_bounds = array<i64: 1, 128>}, {pipeline_mode = #tpu.pipeline_mode<synchronous>, transform_indices = @transform_3, window_bounds = array<i64: 128, 64>}, {pipeline_mode = #tpu.pipeline_mode<synchronous>, transform_indices = @transform_4, window_bounds = array<i64: 1, 64>}, {pipeline_mode = #tpu.pipeline_mode<synchronous>, transform_indices = @transform_5, window_bounds = array<i64: 64, 8>}, {pipeline_mode = #tpu.pipeline_mode<synchronous>, transform_indices = @transform_6, window_bounds = array<i64: 1, 8>}, {transform_indices = @transform_7, window_bounds = array<i64: 8, 8>}]} {
    %c0 = arith.constant 0 : index
    %c0_0 = arith.constant 0 : index
    %0 = vector.load %arg1[%c0, %c0_0] : memref<8x32xf32, #tpu.memory_space<vmem>>, vector<8x32xf32>
    %1 = arith.truncf %0 : vector<8x32xf32> to vector<8x32xbf16>
    %c0_1 = arith.constant 0 : index
    %c0_2 = arith.constant 0 : index
    %2 = vector.load %arg2[%c0_1, %c0_2] : memref<32x128xbf16, #tpu.memory_space<vmem>>, vector<32x128xbf16>
    %cst = arith.constant dense<0.000000e+00> : vector<8x128xf32>
    %3 = tpu.matmul %1, %2, %cst {dimension_numbers = #tpu.dot_dimension_numbers<[1], [0], [0], [1], [0, 0, 1, 1], [], []>} : vector<8x32xbf16>, vector<32x128xbf16>, vector<8x128xf32> -> vector<8x128xf32>
    %c0_3 = arith.constant 0 : index
    %c0_4 = arith.constant 0 : index
    %4 = vector.load %arg3[%c0_3, %c0_4] : memref<1x128xf32, #tpu.memory_space<vmem>>, vector<1x128xf32>
    %5 = vector.broadcast %4 : vector<1x128xf32> to vector<8x128xf32>
    %6 = arith.addf %3, %5 : vector<8x128xf32>
    %cst_5 = arith.constant 0.000000e+00 : f32
    %7 = vector.broadcast %cst_5 : f32 to vector<8x128xf32>
    %8 = arith.maximumf %6, %7 : vector<8x128xf32>
    %c0_6 = arith.constant 0 : index
    %c0_7 = arith.constant 0 : index
    %9 = vector.load %arg4[%c0_6, %c0_7] : memref<128x64xbf16, #tpu.memory_space<vmem>>, vector<128x64xbf16>
    %10 = arith.extf %9 : vector<128x64xbf16> to vector<128x64xf32>
    %cst_8 = arith.constant dense<0.000000e+00> : vector<8x64xf32>
    %11 = tpu.matmul %8, %10, %cst_8 {dimension_numbers = #tpu.dot_dimension_numbers<[1], [0], [0], [1], [0, 0, 1, 1], [], []>} : vector<8x128xf32>, vector<128x64xf32>, vector<8x64xf32> -> vector<8x64xf32>
    %c0_9 = arith.constant 0 : index
    %c0_10 = arith.constant 0 : index
    %12 = vector.load %arg5[%c0_9, %c0_10] : memref<1x64xf32, #tpu.memory_space<vmem>>, vector<1x64xf32>
    %13 = vector.broadcast %12 : vector<1x64xf32> to vector<8x64xf32>
    %14 = arith.addf %11, %13 : vector<8x64xf32>
    %cst_11 = arith.constant 0.000000e+00 : f32
    %15 = vector.broadcast %cst_11 : f32 to vector<8x64xf32>
    %16 = arith.maximumf %14, %15 : vector<8x64xf32>
    %c0_12 = arith.constant 0 : index
    %c0_13 = arith.constant 0 : index
    %17 = vector.load %arg6[%c0_12, %c0_13] : memref<64x8xbf16, #tpu.memory_space<vmem>>, vector<64x8xbf16>
    %18 = arith.extf %17 : vector<64x8xbf16> to vector<64x8xf32>
    %cst_14 = arith.constant dense<0.000000e+00> : vector<8x8xf32>
    %19 = tpu.matmul %16, %18, %cst_14 {dimension_numbers = #tpu.dot_dimension_numbers<[1], [0], [0], [1], [0, 0, 1, 1], [], []>} : vector<8x64xf32>, vector<64x8xf32>, vector<8x8xf32> -> vector<8x8xf32>
    %c0_15 = arith.constant 0 : index
    %c0_16 = arith.constant 0 : index
    %20 = vector.load %arg7[%c0_15, %c0_16] : memref<1x8xf32, #tpu.memory_space<vmem>>, vector<1x8xf32>
    %21 = vector.broadcast %20 : vector<1x8xf32> to vector<8x8xf32>
    %22 = arith.addf %19, %21 : vector<8x8xf32>
    %23 = math.tanh %22 : vector<8x8xf32>
    %c0_17 = arith.constant 0 : index
    %c0_18 = arith.constant 0 : index
    %24 = vector.load %arg8[%c0_17, %c0_18] : memref<8x8xf32, #tpu.memory_space<vmem>>, vector<8x8xf32>
    tpu.vector_store %arg8[%c0_17, %c0_18], %23 {strides = array<i32>} : memref<8x8xf32, #tpu.memory_space<vmem>>, vector<8x8xf32>,
    return
  }
  func.func @transform_0(%arg0: i32) -> (i32, i32) {
    %c0_i32 = arith.constant 0 : i32
    %c0_i32_0 = arith.constant 0 : i32
    return %arg0, %c0_i32 : i32, i32
  }
  func.func @transform_1(%arg0: i32) -> (i32, i32) {
    %c0_i32 = arith.constant 0 : i32
    %c0_i32_0 = arith.constant 0 : i32
    %c0_i32_1 = arith.constant 0 : i32
    return %c0_i32, %c0_i32_0 : i32, i32
  }
  func.func @transform_2(%arg0: i32) -> (i32, i32) {
    %c0_i32 = arith.constant 0 : i32
    %c0_i32_0 = arith.constant 0 : i32
    %c0_i32_1 = arith.constant 0 : i32
    return %c0_i32, %c0_i32_0 : i32, i32
  }
  func.func @transform_3(%arg0: i32) -> (i32, i32) {
    %c0_i32 = arith.constant 0 : i32
    %c0_i32_0 = arith.constant 0 : i32
    %c0_i32_1 = arith.constant 0 : i32
    return %c0_i32, %c0_i32_0 : i32, i32
  }
  func.func @transform_4(%arg0: i32) -> (i32, i32) {
    %c0_i32 = arith.constant 0 : i32
    %c0_i32_0 = arith.constant 0 : i32
    %c0_i32_1 = arith.constant 0 : i32
    return %c0_i32, %c0_i32_0 : i32, i32
  }
  func.func @transform_5(%arg0: i32) -> (i32, i32) {
    %c0_i32 = arith.constant 0 : i32
    %c0_i32_0 = arith.constant 0 : i32
    %c0_i32_1 = arith.constant 0 : i32
    return %c0_i32, %c0_i32_0 : i32, i32
  }
  func.func @transform_6(%arg0: i32) -> (i32, i32) {
    %c0_i32 = arith.constant 0 : i32
    %c0_i32_0 = arith.constant 0 : i32
    %c0_i32_1 = arith.constant 0 : i32
    return %c0_i32, %c0_i32_0 : i32, i32
  }
  func.func @transform_7(%arg0: i32) -> (i32, i32) {
    %c0_i32 = arith.constant 0 : i32
    %c0_i32_0 = arith.constant 0 : i32
    return %arg0, %c0_i32 : i32, i32
  }
}

</mosaic_0001>

<bundles_post_ra>
// kernel: tpu_custom_call.1
= control target key start
LH: loop header
LB: loop body
LE: loop exit
PB: predicated region body
PF: predicated region fallthrough
CT: control target
= control target key end

     0   :  { %s388_s0 = inlined_call_operand.vmem [shape: f32[8,32], index: 0, kind: input, shape index: {}]   ;;  %s389_s1 = inlined_call_operand.vmem [shape: bf16[32,128], index: 1, kind: input, shape index: {}]   ;;  %s390_s2 = inlined_call_operand.vmem [shape: f32[1,128], index: 2, kind: input, shape index: {}]   ;;  %s391_s3 = inlined_call_operand.vmem [shape: bf16[128,64], index: 3, kind: input, shape index: {}]   ;;  %s392_s4 = inlined_call_operand.vmem [shape: f32[1,64], index: 4, kind: input, shape index: {}]   ;;  %s393_s5 = inlined_call_operand.vmem [shape: bf16[64,8], index: 5, kind: input, shape index: {}]   ;;  %s394_s6 = inlined_call_operand.vmem [shape: f32[1,8], index: 6, kind: input, shape index: {}]   ;;  %s395_s7 = inlined_call_operand.hbm [shape: f32[8,8], index: 7, kind: output, shape index: {}]  }
   0x1   :  { %v199_v0 = vld [vmem:[%s389_s1 + $0x8] sm:$0xff]  ;;  %v254_v1 = vld [vmem:[%s391_s3 + $0x38] sm:$0xff]   ;;  %v253_v2 = vld [vmem:[%s391_s3 + $0x30] sm:$0xff]  }
   0x2   :  { %60 = vmatpush.bf16.msra.mxu0 %v199_v0  ;;  %v198_v3 = vld [vmem:[%s389_s1] sm:$0xff]  ;;  %v231_v5 = vunpack.c.h.bf16 %v254_v1  ;;  %v230_v6 = vunpack.c.l.bf16 %v254_v1  ;;  %v227_v7 = vunpack.c.h.bf16 %v253_v2 }
   0x3   :  { %v28_v4 = vld [vmem:[%s388_s0] sm:$0xff] }
   0x4   :  { %104 = vmatpush.msra.mxu1 %v231_v5 }
   0x5   :  { %12 = vsyncpa [#allocation3], 0  ;;  %v29_v8 = vpack.c.bf16 %v28_v4, %v28_v4  ;;  %v252_v9 = vld [vmem:[%s391_s3 + $0x28] sm:$0xff]   ;;  %vm50_vm0 = vcmask 261120   ;;  %v226_v10 = vunpack.c.l.bf16 %v253_v2  ;;  %v251_v12 = vld [vmem:[%s391_s3 + $0x20] sm:$0xff]   ;;  %vm145_vm1 = vcmask 523264  }
   0x6   :  { %61 = vmatpush.bf16.msra.mxu0 %v198_v3  ;;  %105 = vmatpush.msra.mxu1 %v230_v6  ;;  %v223_v11 = vunpack.c.h.bf16 %v252_v9  ;;  %v222_v13 = vunpack.c.l.bf16 %v252_v9  ;;  %v219_v14 = vunpack.c.h.bf16 %v251_v12  ;;  %v250_v15 = vld [vmem:[%s391_s3 + $0x18] sm:$0xff]   ;;  %v218_v16 = vunpack.c.l.bf16 %v251_v12  ;;  %v249_v18 = vld [vmem:[%s391_s3 + $0x10] sm:$0xff]   ;;  %v248_v21 = vld [vmem:[%s391_s3 + $0x8] sm:$0xff]   ;;  %s179_s1 = sshll.u32 %s395_s7, 4  ;;  %s180_s1 = int_to_ptr.hbm [resolvable:$true] %s179_s1 }
   0x7   :  { %v215_v17 = vunpack.c.h.bf16 %v250_v15  ;;  %v214_v19 = vunpack.c.l.bf16 %v250_v15  ;;  %v211_v20 = vunpack.c.h.bf16 %v249_v18  ;;  %v210_v22 = vunpack.c.l.bf16 %v249_v18  ;;  %v201_v25 = vld [vmem:[%s391_s3] sm:$0xff]   ;;  %v257_v28 = vld [vmem:[%s393_s5 + $0x18] sm:$0xff]   ;;  %v256_v29 = vld [vmem:[%s393_s5 + $0x10] sm:$0xff]  }
   0x8   :  { %106 = vmatpush.msra.mxu1 %v227_v7  ;;  %v207_v23 = vunpack.c.h.bf16 %v248_v21  ;;  %v206_v24 = vunpack.c.l.bf16 %v248_v21  ;;  %v203_v26 = vunpack.c.h.bf16 %v201_v25  ;;  %v202_v27 = vunpack.c.l.bf16 %v201_v25  ;;  %v255_v33 = vld [vmem:[%s393_s5 + $0x8] sm:$0xff]   ;;  %v259_v36 = vld [vmem:[%s390_s2] ss:$0 sm:$0xff] }
   0x9   :  { %196 = vmatmul.msk.bf16.vlgmr.msra.gmra.mxu0 %vm50_vm0, %v29_v8  ;;  %v247_v30 = vunpack.c.h.bf16 %v257_v28  ;;  %v246_v31 = vunpack.c.l.bf16 %v257_v28  ;;  %v243_v32 = vunpack.c.h.bf16 %v256_v29  ;;  %v242_v34 = vunpack.c.l.bf16 %v256_v29  ;;  %v233_v42 = vld [vmem:[%s393_s5] sm:$0xff]   ;;  %s290_s5 = smov [#allocation2]  }
   0xa   :  { %107 = vmatpush.msra.mxu1 %v226_v10  ;;  %v239_v35 = vunpack.c.h.bf16 %v255_v33  ;;  %v238_v41 = vunpack.c.l.bf16 %v255_v33  ;;  %v235_v43 = vunpack.c.h.bf16 %v233_v42  ;;  %v234_v44 = vunpack.c.l.bf16 %v233_v42  ;;  %v260_v45 = vld [vmem:[%s392_s4] ss:$0 sm:$0xff]  ;;  %s177_s10 = sshll.u32 %s290_s5, 4  ;;  %s178_s10 = int_to_ptr.vmem [resolvable:$true] %s177_s10 }
   0xb   :  { %157 = vmatpush.msra.mxu2 %v247_v30  ;;  %v261_v49 = vld [vmem:[%s394_s6] ss:$0 sm:$0xff]  ;;  %vm170_vm2 = vcmask 64512  }
   0xc   :  { %108 = vmatpush.msra.mxu1 %v223_v11 }
   0xd   :  { %158 = vmatpush.msra.mxu2 %v246_v31 }
   0xe   :  { %109 = vmatpush.msra.mxu1 %v222_v13 }
   0xf   :  { %159 = vmatpush.msra.mxu2 %v243_v32 }
  0x10   :  { %110 = vmatpush.msra.mxu1 %v219_v14 }
  0x11   :  { %160 = vmatpush.msra.mxu2 %v242_v34 }
  0x12   :  { %111 = vmatpush.msra.mxu1 %v218_v16 }
  0x13   :  { %161 = vmatpush.msra.mxu2 %v239_v35 }
  0x14   :  { %112 = vmatpush.msra.mxu1 %v215_v17 }
  0x15   :  { %162 = vmatpush.msra.mxu2 %v238_v41 }
  0x16   :  { %113 = vmatpush.msra.mxu1 %v214_v19 }
  0x17   :  { %163 = vmatpush.msra.mxu2 %v235_v43 }
  0x18   :  { %114 = vmatpush.msra.mxu1 %v211_v20 }
  0x19   :  { %164 = vmatpush.msra.mxu2 %v234_v44 }
  0x1a   :  { %115 = vmatpush.msra.mxu1 %v210_v22 }
  0x1c   :  { %116 = vmatpush.msra.mxu1 %v207_v23 }
  0x1e   :  { %117 = vmatpush.msra.mxu1 %v206_v24 }
  0x20   :  { %118 = vmatpush.msra.mxu1 %v203_v26 }
  0x22   :  { %119 = vmatpush.msra.mxu1 %v202_v27 }
  0x86   :  { %v63_v37 = vpop.f32.mrf.mxu0 }
  0x87   :  { %v64_v38 = vadd.f32 %v259_v36, %v63_v37 }
  0x89   :  { %v67_v39 = vmax.f32 %v64_v38, 0.0 }
  0x8b   :  { %120 = vmatmul.f32.vlgmr.msra.gmra.mxu1 %v67_v39 }
  0x8e   :  { %v65_v40 = vpop.f32.mrf.mxu0 }
 0x108   :  { %v121_v46 = vpop.f32.mrf.mxu1 }
 0x109   :  { %v122_v47 = vadd.f32 %v260_v45, %v121_v46 }
 0x10b   :  { %v124_v48 = vmax.f32 %v122_v47, 0.0 }
 0x10d   :  { %197 = vmatmul.msk.f32.vlgmr.msra.gmra.mxu2 %vm145_vm1, %v124_v48 }
 0x190   :  { %v166_v50 = vpop.f32.mrf.mxu2 }
 0x191   :  { %v167_v51 = vadd.f32 %v261_v49, %v166_v50 }
 0x193   :  { %262 = vtanh.f32 %v167_v51 }
 0x199   :  { %v263_v52 = vpop.eup %262 }
 0x19a   :  { %171 = vst.msk [vmem:[#allocation2] sm:$0xff] %vm170_vm2, %v263_v52 }
 0x19b   :  { %182 = dma.vmem_to_hbm [thread:$0]  %s178_s10, 128, %s180_s1, [#allocation3]  }
 0x19c   :  { %288 = dma.done.wait [#allocation3], 128  }
 0x19d   :  { %289 = vsyncadd [#allocation3], 4294967168 }
 0x19e   :  { %187 = vsyncpa [#allocation3], 1 }

</bundles_post_ra>
